<compile_context>
chip_gen: v5e
topology: v5e:2x2
jax: 0.10.0
libtpu: 0.0.40
codegen_flags: <defaults>
</compile_context>

<pallas_src>
import functools

import jax
import jax.numpy as jnp
from jax.experimental import pallas as pl
from jax.experimental.pallas import tpu as pltpu


def _layernorm_kernel(x_ref, gamma_ref, beta_ref, o_ref):
    """Plain path: dim on lanes, cross-lane (XLU) reductions."""
    x = x_ref[...].astype(jnp.float32)                    # [rows_blk, dim]
    dim = x.shape[-1]
    s1 = jnp.sum(x, axis=-1, keepdims=True)               # XLU
    s2 = jnp.sum(x * x, axis=-1, keepdims=True)           # XLU
    mean = s1 * jnp.float32(1.0 / dim)
    # torch.var default is unbiased (divide by N-1); guard dim == 1.
    var = (s2 - mean * s1) * jnp.float32(1.0 / max(dim - 1, 1))
    var = jnp.maximum(var, jnp.float32(0.0))              # cancellation guard
    inv = jax.lax.rsqrt(var + jnp.float32(1e-5))          # EUP
    y = (gamma_ref[...].astype(jnp.float32) * ((x - mean) * inv)
         + beta_ref[...].astype(jnp.float32))
    o_ref[...] = y.astype(o_ref.dtype)


def _layernorm_folded_kernel(x_ref, gamma_ref, beta_ref, seg_ref, o_ref, *, dim):
    """Lane-dense path for dim < 128: k = 128//dim rows folded per vreg row.

    Segmented (per-row-of-dim) sums run on the otherwise-idle MXU via a
    resident block-diagonal ones matrix; the matmul also broadcasts the
    per-segment statistics back to every lane of that segment, so stores are
    full-lane unmasked vst.
    """
    x = x_ref[...].astype(jnp.float32)                    # [rows_blk, k*dim]
    seg = seg_ref[...]                                    # [k*dim, k*dim] 0/1 f32
    s1 = jnp.dot(x, seg, preferred_element_type=jnp.float32,
                 precision=jax.lax.Precision.HIGHEST)     # segment sums, broadcast
    s2 = jnp.dot(x * x, seg, preferred_element_type=jnp.float32,
                 precision=jax.lax.Precision.HIGHEST)
    mean = s1 * jnp.float32(1.0 / dim)
    var = (s2 - mean * s1) * jnp.float32(1.0 / max(dim - 1, 1))
    var = jnp.maximum(var, jnp.float32(0.0))
    inv = jax.lax.rsqrt(var + jnp.float32(1e-5))
    y = (gamma_ref[...].astype(jnp.float32) * ((x - mean) * inv)
         + beta_ref[...].astype(jnp.float32))
    o_ref[...] = y.astype(o_ref.dtype)


def _vmem_capacity_bytes():
    try:
        info = pltpu.get_tpu_info()
        return int(getattr(info, "vmem_capacity_bytes", 128 << 20))
    except Exception:
        return 128 << 20


def _pick_block_rows(rows, width, itemsize, vmem_bytes):
    """Byte-budgeted row tile, dtype-aware sublane rounding, >=2 blocks on v7x."""
    small_vmem = vmem_bytes < (100 << 20)          # v7x-like: 64 MiB/TC, 2 TCs
    tile_budget = (4 << 20) if small_vmem else (8 << 20)

    sublane = max(8, 32 // max(1, itemsize))       # f32:8  bf16:16  int8/fp8:32
    row_bytes = max(1, width * itemsize)
    br = max(sublane, (tile_budget // row_bytes) // sublane * sublane)

    rows_rounded = pl.cdiv(rows, sublane) * sublane
    br = min(br, rows_rounded)                     # don't tile past the data

    if small_vmem and rows_rounded > sublane:
        # Guarantee >=2 grid blocks so the "parallel" row axis can shard
        # across both TensorCores on v7x.
        half = pl.cdiv(pl.cdiv(rows, 2), sublane) * sublane
        br = min(br, max(sublane, half))
    return br


def layer_norm(x, gamma, beta, *, block_rows=None):
    """LayerNorm over the last dimension of x.   x: [..., dim], gamma/beta: [dim]."""
    orig_shape = x.shape
    dim = orig_shape[-1]
    rows = 1
    for s in orig_shape[:-1]:
        rows *= s

    itemsize = jnp.dtype(x.dtype).itemsize
    vmem_bytes = _vmem_capacity_bytes()

    # Lane-dense fold for narrow dims: pack k rows into the 128-lane width.
    k = 128 // dim if (0 < dim < 128 and 128 % dim == 0) else 1
    folded = k > 1 and rows % k == 0 and rows >= k
    # TODO(synk): handle the rows % k != 0 tail in the folded path (currently
    # falls back to the masked-store plain path for that case).

    if folded:
        width = k * dim
        rows_eff = rows // k
        x2 = x.reshape(rows_eff, width)            # contiguous reshape: no HBM copy
        g2 = jnp.tile(gamma.reshape(-1), k).reshape(1, width)
        b2 = jnp.tile(beta.reshape(-1), k).reshape(1, width)
        lane_ids = jnp.arange(width) // dim
        seg = (lane_ids[:, None] == lane_ids[None, :]).astype(jnp.float32)
        kernel = functools.partial(_layernorm_folded_kernel, dim=dim)
    else:
        width = dim
        rows_eff = rows
        x2 = x.reshape(rows_eff, width)
        g2 = gamma.reshape(1, width)
        b2 = beta.reshape(1, width)
        seg = None
        kernel = _layernorm_kernel

    if block_rows is None:
        block_rows = _pick_block_rows(rows_eff, width, itemsize, vmem_bytes)

    # No padding / slicing: the grid covers a partial last block.  OOB reads
    # are don't-care (rows are independent) and OOB writes are dropped.
    num_blocks = pl.cdiv(rows_eff, block_rows)

    # Scoped VMEM: 2x input + 2x output buffers of one tile plus residents.
    tile_bytes = block_rows * width * itemsize
    vmem_limit = int(max(32 << 20, 5 * tile_bytes + (2 << 20)))
    vmem_limit = min(vmem_limit,
                     (48 << 20) if vmem_bytes < (100 << 20) else (96 << 20))

    param_bytes = jnp.dtype(gamma.dtype).itemsize
    cost = pl.CostEstimate(
        flops=8 * rows_eff * width,
        transcendentals=rows_eff,
        bytes_accessed=2 * rows_eff * width * itemsize + 2 * width * param_bytes,
    )

    in_specs = [
        pl.BlockSpec((block_rows, width), lambda i: (i, 0)),
        pl.BlockSpec((1, width), lambda i: (0, 0)),    # gamma (resident)
        pl.BlockSpec((1, width), lambda i: (0, 0)),    # beta  (resident)
    ]
    operands = [x2, g2, b2]
    if folded:
        in_specs.append(pl.BlockSpec((width, width), lambda i: (0, 0)))  # seg mat
        operands.append(seg)

    out = pl.pallas_call(
        kernel,
        out_shape=jax.ShapeDtypeStruct((rows_eff, width), x.dtype),
        grid_spec=pltpu.PrefetchScalarGridSpec(
            num_scalar_prefetch=0,
            grid=(num_blocks,),
            in_specs=in_specs,
            out_specs=pl.BlockSpec((block_rows, width), lambda i: (i, 0)),
        ),
        compiler_params=pltpu.CompilerParams(
            dimension_semantics=("parallel",),
            vmem_limit_bytes=vmem_limit,
        ),
        cost_estimate=cost,
    )(*operands)

    return out.reshape(orig_shape)


if __name__ == "__main__":
    key = jax.random.PRNGKey(0)
    batch, seq, hidden = 2, 8, 32

    x = jax.random.normal(key, (batch, seq, hidden), dtype=jnp.float32)
    # Deterministic params matching nn.Parameter(torch.ones/zeros(dim)).
    gamma = jnp.ones((hidden,), dtype=jnp.float32)
    beta = jnp.zeros((hidden,), dtype=jnp.float32)

    def ref_ln(x, gamma, beta):
        # Matches the PyTorch module: unbiased (N-1) variance, eps inside sqrt.
        mean = jnp.mean(x, axis=-1, keepdims=True)
        xc = x - mean
        var = jnp.sum(xc * xc, axis=-1, keepdims=True) / (x.shape[-1] - 1)
        return gamma * (xc / jnp.sqrt(var + 1e-5)) + beta

    # Lane-dense (folded) path: 16 rows of dim 32 -> 4 x 128 slab.
    y = jax.block_until_ready(layer_norm(x, gamma, beta))
    assert jnp.allclose(y, ref_ln(x, gamma, beta), atol=1e-4, rtol=1e-5), \
        "mismatch vs reference (folded path)"

    # Plain path with a partial last block (21 rows, block_rows=8 -> 3 blocks).
    x_odd = jax.random.normal(key, (3, 7, hidden), dtype=jnp.float32)
    y_odd = jax.block_until_ready(layer_norm(x_odd, gamma, beta, block_rows=8))
    assert jnp.allclose(y_odd, ref_ln(x_odd, gamma, beta), atol=1e-4, rtol=1e-5), \
        "mismatch vs reference (partial-block path)"

    print("KERNEL_OK")
</pallas_src>

<mosaic_0001>
module attributes {stable_mosaic.version = 11 : i64} {
  func.func @_layernorm_folded_kernel(%arg0: i32, %arg1: memref<8x128xf32, #tpu.memory_space<vmem>>, %arg2: memref<1x128xf32, #tpu.memory_space<vmem>>, %arg3: memref<1x128xf32, #tpu.memory_space<vmem>>, %arg4: memref<128x128xf32, #tpu.memory_space<vmem>>, %arg5: memref<8x128xf32, #tpu.memory_space<vmem>>) attributes {dimension_semantics = [#tpu.dimension_semantics<parallel>], iteration_bounds = array<i64: 1>, scalar_prefetch = 0 : i64, scratch_operands = 0 : i64, tpu.core_type = #tpu.core_type<tc>, window_params = [{transform_indices = @transform_0, window_bounds = array<i64: 8, 128>}, {pipeline_mode = #tpu.pipeline_mode<synchronous>, transform_indices = @transform_1, window_bounds = array<i64: 1, 128>}, {pipeline_mode = #tpu.pipeline_mode<synchronous>, transform_indices = @transform_2, window_bounds = array<i64: 1, 128>}, {pipeline_mode = #tpu.pipeline_mode<synchronous>, transform_indices = @transform_3, window_bounds = array<i64: 128, 128>}, {transform_indices = @transform_4, window_bounds = array<i64: 8, 128>}]} {
    %c0 = arith.constant 0 : index
    %c0_0 = arith.constant 0 : index
    %0 = vector.load %arg1[%c0, %c0_0] : memref<8x128xf32, #tpu.memory_space<vmem>>, vector<8x128xf32>
    %c0_1 = arith.constant 0 : index
    %c0_2 = arith.constant 0 : index
    %1 = vector.load %arg4[%c0_1, %c0_2] : memref<128x128xf32, #tpu.memory_space<vmem>>, vector<128x128xf32>
    %cst = arith.constant dense<0.000000e+00> : vector<8x128xf32>
    %2 = tpu.matmul %0, %1, %cst {dimension_numbers = #tpu.dot_dimension_numbers<[1], [0], [0], [1], [0, 0, 1, 1], [], []>, precision = #tpu.contract_precision<fp32>} : vector<8x128xf32>, vector<128x128xf32>, vector<8x128xf32> -> vector<8x128xf32>
    %3 = arith.mulf %0, %0 : vector<8x128xf32>
    %cst_3 = arith.constant dense<0.000000e+00> : vector<8x128xf32>
    %4 = tpu.matmul %3, %1, %cst_3 {dimension_numbers = #tpu.dot_dimension_numbers<[1], [0], [0], [1], [0, 0, 1, 1], [], []>, precision = #tpu.contract_precision<fp32>} : vector<8x128xf32>, vector<128x128xf32>, vector<8x128xf32> -> vector<8x128xf32>
    %cst_4 = arith.constant 3.125000e-02 : f32
    %5 = vector.broadcast %cst_4 : f32 to vector<8x128xf32>
    %6 = arith.mulf %2, %5 : vector<8x128xf32>
    %7 = arith.mulf %6, %2 : vector<8x128xf32>
    %8 = arith.subf %4, %7 : vector<8x128xf32>
    %cst_5 = arith.constant 0.0322580636 : f32
    %9 = vector.broadcast %cst_5 : f32 to vector<8x128xf32>
    %10 = arith.mulf %8, %9 : vector<8x128xf32>
    %cst_6 = arith.constant 0.000000e+00 : f32
    %11 = vector.broadcast %cst_6 : f32 to vector<8x128xf32>
    %12 = arith.maximumf %10, %11 : vector<8x128xf32>
    %cst_7 = arith.constant 9.99999974E-6 : f32
    %13 = vector.broadcast %cst_7 : f32 to vector<8x128xf32>
    %14 = arith.addf %12, %13 : vector<8x128xf32>
    %15 = math.rsqrt %14 : vector<8x128xf32>
    %c0_8 = arith.constant 0 : index
    %c0_9 = arith.constant 0 : index
    %16 = vector.load %arg2[%c0_8, %c0_9] : memref<1x128xf32, #tpu.memory_space<vmem>>, vector<1x128xf32>
    %17 = arith.subf %0, %6 : vector<8x128xf32>
    %18 = arith.mulf %17, %15 : vector<8x128xf32>
    %19 = vector.broadcast %16 : vector<1x128xf32> to vector<8x128xf32>
    %20 = arith.mulf %19, %18 : vector<8x128xf32>
    %c0_10 = arith.constant 0 : index
    %c0_11 = arith.constant 0 : index
    %21 = vector.load %arg3[%c0_10, %c0_11] : memref<1x128xf32, #tpu.memory_space<vmem>>, vector<1x128xf32>
    %22 = vector.broadcast %21 : vector<1x128xf32> to vector<8x128xf32>
    %23 = arith.addf %20, %22 : vector<8x128xf32>
    %c0_12 = arith.constant 0 : index
    %c0_13 = arith.constant 0 : index
    %24 = vector.load %arg5[%c0_12, %c0_13] : memref<8x128xf32, #tpu.memory_space<vmem>>, vector<8x128xf32>
    tpu.vector_store %arg5[%c0_12, %c0_13], %23 {strides = array<i32>} : memref<8x128xf32, #tpu.memory_space<vmem>>, vector<8x128xf32>,
    return
  }
  func.func @transform_0(%arg0: i32) -> (i32, i32) {
    %c0_i32 = arith.constant 0 : i32
    %c0_i32_0 = arith.constant 0 : i32
    return %arg0, %c0_i32 : i32, i32
  }
  func.func @transform_1(%arg0: i32) -> (i32, i32) {
    %c0_i32 = arith.constant 0 : i32
    %c0_i32_0 = arith.constant 0 : i32
    %c0_i32_1 = arith.constant 0 : i32
    return %c0_i32, %c0_i32_0 : i32, i32
  }
  func.func @transform_2(%arg0: i32) -> (i32, i32) {
    %c0_i32 = arith.constant 0 : i32
    %c0_i32_0 = arith.constant 0 : i32
    %c0_i32_1 = arith.constant 0 : i32
    return %c0_i32, %c0_i32_0 : i32, i32
  }
  func.func @transform_3(%arg0: i32) -> (i32, i32) {
    %c0_i32 = arith.constant 0 : i32
    %c0_i32_0 = arith.constant 0 : i32
    %c0_i32_1 = arith.constant 0 : i32
    return %c0_i32, %c0_i32_0 : i32, i32
  }
  func.func @transform_4(%arg0: i32) -> (i32, i32) {
    %c0_i32 = arith.constant 0 : i32
    %c0_i32_0 = arith.constant 0 : i32
    return %arg0, %c0_i32 : i32, i32
  }
}

</mosaic_0001>

<bundles_post_ra>
// kernel: tpu_custom_call.1
= control target key start
LH: loop header
LB: loop body
LE: loop exit
PB: predicated region body
PF: predicated region fallthrough
CT: control target
= control target key end

     0   :  { %9 = vsyncpa [#allocation3], 0  ;;  %s1383_s0 = inlined_call_operand.hbm [shape: f32[4,128], index: 0, kind: input, shape index: {}]   ;;  %s1384_s1 = inlined_call_operand.hbm [shape: f32[1,128], index: 1, kind: input, shape index: {}]   ;;  %s1385_s2 = inlined_call_operand.vmem [shape: f32[1,128], index: 2, kind: input, shape index: {}]   ;;  %s1386_s3 = inlined_call_operand.hbm [shape: f32[128,128], index: 3, kind: input, shape index: {}]   ;;  %s1387_s4 = inlined_call_operand.hbm [shape: f32[4,128], index: 4, kind: output, shape index: {}]  }
   0x1   :  { %10 = vsyncpa [#allocation6], 0 }
   0x2   :  { %11 = vsyncpa [#allocation4], 0  ;;  %s30_s17 = sshll.u32 %s1384_s1, 4  ;;  %s31_s17 = int_to_ptr.hbm [resolvable:$true] %s30_s17 }
   0x3   :  { %15 = vsyncadd [#allocation3], 64  ;;  %s926_s18 = smov [#allocation5]   ;;  %s16_s22 = sshll.u32 %s1383_s0, 4  ;;  %s17_s22 = int_to_ptr.hbm [resolvable:$true] %s16_s22 }
   0x4   :  { %s32_s19 = sshll.u32 %s926_s18, 4  ;;  %s927_s23 = smov [#allocation2]   ;;  %s33_s19 = int_to_ptr.vmem [resolvable:$true] %s32_s19 }
   0x5   :  { %35 = dma.hbm_to_vmem [thread:$0]  %s31_s17, 16, %s33_s19, [#allocation6]  }
   0x6   :  { %s18_s24 = sshll.u32 %s927_s23, 4  ;;  %s928_s25 = smov 64   ;;  %s19_s24 = int_to_ptr.vmem [resolvable:$true] %s18_s24 }
   0x7   :  { %s929_s26 = smov 4   ;;  %s42_s28 = sshll.u32 %s1386_s3, 4  ;;  %s43_s28 = int_to_ptr.hbm [resolvable:$true] %s42_s28 }
   0x8   :  { %24 = dma.hbm_to_vmem [thread:$0]  %s17_s22, 64, %s19_s24, [#allocation3], %s928_s25, %s928_s25, %s929_s26  }
   0x9   :  { %s930_s29 = smov [#allocation7]   ;;  %s931_s0 = smov 128  }
   0xa   :  { %s44_s30 = sshll.u32 %s930_s29, 4  ;;  %s932_s5 = smov 8   ;;  %s45_s30 = int_to_ptr.vmem [resolvable:$true] %s44_s30 }
   0xb   :  { %50 = dma.hbm_to_vmem [thread:$0]  %s43_s28, 2048, %s45_s30, [#allocation6], %s931_s0, %s931_s0, %s932_s5  }
   0xc   :  { %920 = dma.done.wait [#allocation3], 128  }
   0xd   :  { %921 = vsyncadd [#allocation3], 4294967168 }
   0xe   :  { %922 = dma.done.wait [#allocation6], 2064  }
   0xf   :  { %923 = vsyncadd [#allocation6], 4294965232  ;;  %v79_v0 = vld [vmem:[#allocation7 + $0x78] sm:$0xff]  ;;  %v78_v1 = vld [vmem:[#allocation7 + $0x70] sm:$0xff] }
  0x10   :  { %v77_v2 = vld [vmem:[#allocation7 + $0x68] sm:$0xff]  ;;  %v971_v3 = vand.u32 4294901760, %v79_v0  ;;  %v973_v4 = vand.u32 4294901760, %v78_v1  ;;  %v76_v6 = vld [vmem:[#allocation7 + $0x60] sm:$0xff]  ;;  %v75_v7 = vld [vmem:[#allocation7 + $0x58] sm:$0xff] }
  0x11   :  { %v975_v5 = vand.u32 4294901760, %v77_v2  ;;  %v74_v8 = vld [vmem:[#allocation7 + $0x50] sm:$0xff]  ;;  %v977_v9 = vand.u32 4294901760, %v76_v6  ;;  %v979_v10 = vand.u32 4294901760, %v75_v7  ;;  %v73_v12 = vld [vmem:[#allocation7 + $0x48] sm:$0xff]  ;;  %v72_v13 = vld [vmem:[#allocation7 + $0x40] sm:$0xff] }
  0x12   :  { %v981_v11 = vand.u32 4294901760, %v74_v8  ;;  %81 = vmatpush.msra.mxu0 %v971_v3  ;;  %v985_v14 = vsub.f32 %v79_v0, %v971_v3  ;;  %v988_v15 = vsub.f32 %v78_v1, %v973_v4  ;;  %277 = vmatpush.msra.mxu3 %v971_v3  ;;  %v994_v17 = vand.u32 4294901760, %v73_v12  ;;  %v71_v21 = vld [vmem:[#allocation7 + $0x38] sm:$0xff]  ;;  %v70_v34 = vld [vmem:[#allocation7 + $0x30] sm:$0xff]  ;;  %v69_v35 = vld [vmem:[#allocation7 + $0x28] sm:$0xff] }
  0x13   :  { %v992_v16 = vsub.f32 %v77_v2, %v975_v5  ;;  %v997_v18 = vsub.f32 %v76_v6, %v977_v9  ;;  %v1000_v19 = vsub.f32 %v75_v7, %v979_v10  ;;  %v1016_v25 = vand.u32 4294901760, %v72_v13  ;;  %v68_v42 = vld [vmem:[#allocation7 + $0x20] sm:$0xff]  ;;  %v67_v48 = vld [vmem:[#allocation7 + $0x18] sm:$0xff]  ;;  %v66_v54 = vld [vmem:[#allocation7 + $0x10] sm:$0xff] }
  0x14   :  { %v1003_v20 = vsub.f32 %v74_v8, %v981_v11  ;;  %224 = vmatpush.msra.mxu2 %v985_v14  ;;  %83 = vmatpush.msra.mxu0 %v973_v4  ;;  %v1008_v22 = vand.u32 4294901760, %v985_v14  ;;  %v1011_v23 = vand.u32 4294901760, %v988_v15  ;;  %v1026_v28 = vsub.f32 %v73_v12, %v994_v17  ;;  %v65_v60 = vld [vmem:[#allocation7 + $0x8] sm:$0xff]  ;;  %v64_v1 = vld [vmem:[#allocation7] sm:$0xff] }
  0x15   :  { %v1014_v24 = vand.u32 4294901760, %v992_v16  ;;  %279 = vmatpush.msra.mxu3 %v973_v4  ;;  %v1020_v26 = vand.u32 4294901760, %v997_v18  ;;  %v1023_v27 = vand.u32 4294901760, %v1000_v19  ;;  %v1036_v32 = vand.u32 4294901760, %v71_v21 }
  0x16   :  { %227 = vmatpush.msra.mxu2 %v988_v15  ;;  %85 = vmatpush.msra.mxu0 %v975_v5  ;;  %v124_v29 = vsub.f32 %v985_v14, %v1008_v22  ;;  %v130_v30 = vsub.f32 %v988_v15, %v1011_v23  ;;  %v1040_v33 = vand.u32 4294901760, %v1003_v20  ;;  %v1051_v39 = vsub.f32 %v72_v13, %v1016_v25 }
  0x17   :  { %v136_v31 = vsub.f32 %v992_v16, %v1014_v24  ;;  %281 = vmatpush.msra.mxu3 %v975_v5  ;;  %v142_v38 = vsub.f32 %v997_v18, %v1020_v26  ;;  %v148_v40 = vsub.f32 %v1000_v19, %v1023_v27  ;;  %v1057_v41 = vand.u32 4294901760, %v1026_v28 }
  0x18   :  { %v1042_v36 = vand.u32 4294901760, %v124_v29  ;;  %230 = vmatpush.msra.mxu2 %v992_v16  ;;  %87 = vmatpush.msra.mxu0 %v977_v9  ;;  %v1046_v37 = vand.u32 4294901760, %v130_v30  ;;  %v1064_v44 = vsub.f32 %v71_v21, %v1036_v32  ;;  %v1066_v45 = vand.u32 4294901760, %v70_v34 }
  0x19   :  { %283 = vmatpush.msra.mxu3 %v977_v9  ;;  %v1061_v43 = vand.u32 4294901760, %v136_v31  ;;  %v1068_v46 = vand.u32 4294901760, %v69_v35  ;;  %v154_v47 = vsub.f32 %v1003_v20, %v1040_v33  ;;  %v1076_v49 = vand.u32 4294901760, %v142_v38 }
  0x1a   :  { %126 = vmatpush.msra.mxu1 %v1042_v36  ;;  %233 = vmatpush.msra.mxu2 %v997_v18  ;;  %v1079_v50 = vand.u32 4294901760, %v1051_v39  ;;  %v1082_v51 = vsub.f32 %v70_v34, %v1066_v45  ;;  %v1084_v52 = vand.u32 4294901760, %v68_v42  ;;  %v160_v53 = vsub.f32 %v1026_v28, %v1057_v41 }
  0x1b   :  { %89 = vmatpush.msra.mxu0 %v979_v10  ;;  %285 = vmatpush.msra.mxu3 %v979_v10  ;;  %v1092_v55 = vand.u32 4294901760, %v148_v40  ;;  %v1095_v56 = vand.u32 4294901760, %v1064_v44  ;;  %v1098_v57 = vsub.f32 %v69_v35, %v1068_v46  ;;  %v1100_v58 = vand.u32 4294901760, %v67_v48 }
  0x1c   :  { %132 = vmatpush.msra.mxu1 %v1046_v37  ;;  %236 = vmatpush.msra.mxu2 %v1000_v19  ;;  %v1103_v59 = vand.u32 4294901760, %v154_v47  ;;  %v166_v61 = vsub.f32 %v1051_v39, %v1079_v50  ;;  %v1111_v62 = vand.u32 4294901760, %v1082_v51  ;;  %v1114_v63 = vsub.f32 %v68_v42, %v1084_v52 }
  0x1d   :  { %91 = vmatpush.msra.mxu0 %v981_v11  ;;  %287 = vmatpush.msra.mxu3 %v981_v11  ;;  %v1116_v0 = vand.u32 4294901760, %v66_v54  ;;  %v1119_v2 = vand.u32 4294901760, %v160_v53  ;;  %v172_v6 = vsub.f32 %v1064_v44, %v1095_v56  ;;  %v1127_v7 = vand.u32 4294901760, %v1098_v57 }
  0x1e   :  { %138 = vmatpush.msra.mxu1 %v1061_v43  ;;  %239 = vmatpush.msra.mxu2 %v1003_v20  ;;  %1390 = vst [vmem:[#allocation12_spill] sm:$0xff] %v1114_v63  ;;  %v1130_v8 = vsub.f32 %v67_v48, %v1100_v58  ;;  %v1132_v12 = vand.u32 4294901760, %v65_v60  ;;  %v1136_v13 = vand.u32 4294901760, %v64_v1  ;;  %v1140_v21 = vand.u32 4294901760, %v166_v61 }
  0x1f   :  { %93 = vmatpush.msra.mxu0 %v994_v17  ;;  %289 = vmatpush.msra.mxu3 %v994_v17  ;;  %v178_v29 = vsub.f32 %v1082_v51, %v1111_v62  ;;  %v1145_v30 = vand.u32 4294901760, %v1114_v63  ;;  %v1148_v31 = vsub.f32 %v66_v54, %v1116_v0  ;;  %v1154_v34 = vand.u32 4294901760, %v172_v6 }
  0x20   :  { %144 = vmatpush.msra.mxu1 %v1076_v49  ;;  %242 = vmatpush.msra.mxu2 %v1026_v28  ;;  %1391 = vst [vmem:[#allocation13_spill] sm:$0xff] %v1130_v8  ;;  %v184_v35 = vsub.f32 %v1098_v57, %v1127_v7  ;;  %v1159_v38 = vand.u32 4294901760, %v1130_v8  ;;  %v1162_v40 = vsub.f32 %v65_v60, %v1132_v12 }
  0x21   :  { %95 = vmatpush.msra.mxu0 %v1016_v25  ;;  %291 = vmatpush.msra.mxu3 %v1016_v25  ;;  %v1168_v42 = vand.u32 4294901760, %v178_v29  ;;  %v190_v47 = vsub.f32 %v1114_v63, %v1145_v30  ;;  %v1173_v48 = vand.u32 4294901760, %v1148_v31  ;;  %v1176_v53 = vsub.f32 %v64_v1, %v1136_v13 }
  0x22   :  { %150 = vmatpush.msra.mxu1 %v1092_v55  ;;  %245 = vmatpush.msra.mxu2 %v1051_v39  ;;  %v1182_v54 = vand.u32 4294901760, %v184_v35  ;;  %v196_v60 = vsub.f32 %v1130_v8, %v1159_v38  ;;  %v1187_v61 = vand.u32 4294901760, %v1162_v40 }
  0x23   :  { %97 = vmatpush.msra.mxu0 %v1036_v32  ;;  %293 = vmatpush.msra.mxu3 %v1036_v32  ;;  %v1193_v1 = vand.u32 4294901760, %v190_v47  ;;  %v202_v6 = vsub.f32 %v1148_v31, %v1173_v48  ;;  %v1198_v29 = vand.u32 4294901760, %v1176_v53 }
  0x24   :  { %156 = vmatpush.msra.mxu1 %v1103_v59  ;;  %248 = vmatpush.msra.mxu2 %v1064_v44  ;;  %v1204_v35 = vand.u32 4294901760, %v196_v60  ;;  %v208_v47 = vsub.f32 %v1162_v40, %v1187_v61 }
  0x25   :  { %99 = vmatpush.msra.mxu0 %v1066_v45  ;;  %295 = vmatpush.msra.mxu3 %v1066_v45 }
  0x26   :  { %162 = vmatpush.msra.mxu1 %v1119_v2  ;;  %251 = vmatpush.msra.mxu2 %v1082_v51  ;;  %v1220_v60 = vand.u32 4294901760, %v208_v47 }
  0x27   :  { %101 = vmatpush.msra.mxu0 %v1068_v46  ;;  %297 = vmatpush.msra.mxu3 %v1068_v46 }
  0x28   :  { %168 = vmatpush.msra.mxu1 %v1140_v21  ;;  %254 = vmatpush.msra.mxu2 %v1098_v57 }
  0x29   :  { %103 = vmatpush.msra.mxu0 %v1084_v52  ;;  %299 = vmatpush.msra.mxu3 %v1084_v52 }
  0x2a   :  { %174 = vmatpush.msra.mxu1 %v1154_v34  ;;  %257 = vmatpush.msra.mxu2 %v1114_v63  ;;  %v214_v63 = vsub.f32 %v1176_v53, %v1198_v29 }
  0x2b   :  { %105 = vmatpush.msra.mxu0 %v1100_v58  ;;  %301 = vmatpush.msra.mxu3 %v1100_v58 }
  0x2c   :  { %180 = vmatpush.msra.mxu1 %v1168_v42  ;;  %260 = vmatpush.msra.mxu2 %v1130_v8  ;;  %v1212_v8 = vand.u32 4294901760, %v202_v6  ;;  %v1226_v6 = vand.u32 4294901760, %v214_v63 }
  0x2d   :  { %107 = vmatpush.msra.mxu0 %v1116_v0  ;;  %303 = vmatpush.msra.mxu3 %v1116_v0 }
  0x2e   :  { %186 = vmatpush.msra.mxu1 %v1182_v54  ;;  %263 = vmatpush.msra.mxu2 %v1148_v31 }
  0x2f   :  { %109 = vmatpush.msra.mxu0 %v1132_v12  ;;  %305 = vmatpush.msra.mxu3 %v1132_v12 }
  0x30   :  { %192 = vmatpush.msra.mxu1 %v1193_v1  ;;  %266 = vmatpush.msra.mxu2 %v1162_v40 }
  0x31   :  { %111 = vmatpush.msra.mxu0 %v1136_v13  ;;  %307 = vmatpush.msra.mxu3 %v1136_v13 }
  0x32   :  { %198 = vmatpush.msra.mxu1 %v1204_v35  ;;  %269 = vmatpush.msra.mxu2 %v1176_v53 }
  0x33   :  { %318 = vmatpush.msrb.mxu0 %v1008_v22  ;;  %468 = vmatpush.msrb.mxu3 %v1042_v36  ;;  %v1240_v36 = vld [vmem:[#allocation2] sm:$0xff] }
  0x34   :  { %423 = vmatpush.msrb.mxu2 %v971_v3  ;;  %204 = vmatpush.msra.mxu1 %v1212_v8  ;;  %v421_v63 = vmul.f32 %v1240_v36, %v1240_v36 }
  0x35   :  { %322 = vmatpush.msrb.mxu0 %v1011_v23  ;;  %474 = vmatpush.msrb.mxu3 %v1046_v37  ;;  %v1249_v37 = vand.u32 4294901760, %v1240_v36 }
  0x36   :  { %425 = vmatpush.msrb.mxu2 %v973_v4  ;;  %210 = vmatpush.msra.mxu1 %v1220_v60 }
  0x37   :  { %326 = vmatpush.msrb.mxu0 %v1014_v24  ;;  %480 = vmatpush.msrb.mxu3 %v1061_v43  ;;  %v113_v43 = vsub.f32 %v1240_v36, %v1249_v37 }
  0x38   :  { %427 = vmatpush.msrb.mxu2 %v975_v5  ;;  %216 = vmatpush.msra.mxu1 %v1226_v6 }
  0x39   :  { %330 = vmatpush.msrb.mxu0 %v1020_v26  ;;  %486 = vmatpush.msrb.mxu3 %v1076_v49  ;;  %v114_v49 = vand.u32 4294901760, %v113_v43 }
  0x3a   :  { %385 = vmatpush.msrb.mxu1 %v971_v3  ;;  %429 = vmatpush.msrb.mxu2 %v977_v9 }
  0x3b   :  { %334 = vmatpush.msrb.mxu0 %v1023_v27  ;;  %492 = vmatpush.msrb.mxu3 %v1092_v55  ;;  %v115_v55 = vsub.f32 %v113_v43, %v114_v49 }
  0x3c   :  { %387 = vmatpush.msrb.mxu1 %v973_v4  ;;  %431 = vmatpush.msrb.mxu2 %v979_v10 }
  0x3d   :  { %338 = vmatpush.msrb.mxu0 %v1040_v33  ;;  %498 = vmatpush.msrb.mxu3 %v1103_v59  ;;  %v116_v59 = vand.u32 4294901760, %v115_v55 }
  0x3e   :  { %389 = vmatpush.msrb.mxu1 %v975_v5  ;;  %433 = vmatpush.msrb.mxu2 %v981_v11 }
  0x3f   :  { %342 = vmatpush.msrb.mxu0 %v1057_v41  ;;  %504 = vmatpush.msrb.mxu3 %v1119_v2 }
  0x40   :  { %391 = vmatpush.msrb.mxu1 %v977_v9  ;;  %435 = vmatpush.msrb.mxu2 %v994_v17 }
  0x41   :  { %346 = vmatpush.msrb.mxu0 %v1079_v50  ;;  %510 = vmatpush.msrb.mxu3 %v1140_v21 }
  0x42   :  { %393 = vmatpush.msrb.mxu1 %v979_v10  ;;  %437 = vmatpush.msrb.mxu2 %v1016_v25 }
  0x43   :  { %350 = vmatpush.msrb.mxu0 %v1095_v56  ;;  %516 = vmatpush.msrb.mxu3 %v1154_v34 }
  0x44   :  { %395 = vmatpush.msrb.mxu1 %v981_v11  ;;  %439 = vmatpush.msrb.mxu2 %v1036_v32 }
  0x45   :  { %354 = vmatpush.msrb.mxu0 %v1111_v62  ;;  %522 = vmatpush.msrb.mxu3 %v1168_v42 }
  0x46   :  { %397 = vmatpush.msrb.mxu1 %v994_v17  ;;  %441 = vmatpush.msrb.mxu2 %v1066_v45 }
  0x47   :  { %358 = vmatpush.msrb.mxu0 %v1127_v7  ;;  %528 = vmatpush.msrb.mxu3 %v1182_v54 }
  0x48   :  { %399 = vmatpush.msrb.mxu1 %v1016_v25  ;;  %443 = vmatpush.msrb.mxu2 %v1068_v46 }
  0x49   :  { %362 = vmatpush.msrb.mxu0 %v1145_v30  ;;  %534 = vmatpush.msrb.mxu3 %v1193_v1 }
  0x4a   :  { %401 = vmatpush.msrb.mxu1 %v1036_v32  ;;  %445 = vmatpush.msrb.mxu2 %v1084_v52 }
  0x4b   :  { %366 = vmatpush.msrb.mxu0 %v1159_v38  ;;  %540 = vmatpush.msrb.mxu3 %v1204_v35 }
  0x4c   :  { %403 = vmatpush.msrb.mxu1 %v1066_v45  ;;  %447 = vmatpush.msrb.mxu2 %v1100_v58 }
  0x4d   :  { %370 = vmatpush.msrb.mxu0 %v1173_v48  ;;  %546 = vmatpush.msrb.mxu3 %v1212_v8 }
  0x4e   :  { %405 = vmatpush.msrb.mxu1 %v1068_v46  ;;  %449 = vmatpush.msrb.mxu2 %v1116_v0 }
  0x4f   :  { %272 = vmatmul.f32.vlgmr.msra.gmra.mxu2 %v113_v43  ;;  %374 = vmatpush.msrb.mxu0 %v1187_v61 }
  0x50   :  { %407 = vmatpush.msrb.mxu1 %v1084_v52  ;;  %451 = vmatpush.msrb.mxu2 %v1132_v12 }
  0x51   :  { %117 = vmatmul.f32.vlgmr.msra.gmra.mxu0 %v116_v59  ;;  %311 = vmatmul.f32.vlgmr.msra.gmra.mxu3 %v114_v49 }
  0x52   :  { %409 = vmatpush.msrb.mxu1 %v1100_v58  ;;  %378 = vmatpush.msrb.mxu0 %v1198_v29 }
  0x53   :  { %453 = vmatpush.msrb.mxu2 %v1136_v13  ;;  %552 = vmatpush.msrb.mxu3 %v1220_v60 }
  0x54   :  { %411 = vmatpush.msrb.mxu1 %v1116_v0  ;;  %566 = vmatpush.msra.mxu0 %v985_v14  ;;  %v1310_v14 = vand.u32 4294901760, %v421_v63 }
  0x55   :  { %218 = vmatmul.f32.vlgmr.msra.gmra.mxu1 %v1249_v37  ;;  %660 = vmatpush.msra.mxu2 %v1008_v22 }
  0x56   :  { %413 = vmatpush.msrb.mxu1 %v1132_v12  ;;  %558 = vmatpush.msrb.mxu3 %v1226_v6 }
  0x57   :  { %569 = vmatpush.msra.mxu0 %v988_v15  ;;  %664 = vmatpush.msra.mxu2 %v1011_v23 }
  0x58   :  { %727 = vmatpush.msra.mxu3 %v971_v3  ;;  %415 = vmatpush.msrb.mxu1 %v1136_v13 }
  0x59   :  { %572 = vmatpush.msra.mxu0 %v992_v16  ;;  %668 = vmatpush.msra.mxu2 %v1014_v24 }
  0x5a   :  { %619 = vmatpush.msra.mxu1 %v971_v3  ;;  %729 = vmatpush.msra.mxu3 %v973_v4  ;;  %v455_v3 = vsub.f32 %v421_v63, %v1310_v14 }
  0x5b   :  { %380 = vmatmul.f32.vlgmr.msrb.gmra.mxu0 %v1249_v37  ;;  %672 = vmatpush.msra.mxu2 %v1020_v26 }
  0x5c   :  { %621 = vmatpush.msra.mxu1 %v973_v4  ;;  %575 = vmatpush.msra.mxu0 %v997_v18  ;;  %v456_v4 = vand.u32 4294901760, %v455_v3 }
  0x5d   :  { %731 = vmatpush.msra.mxu3 %v975_v5  ;;  %417 = vmatmul.f32.vlgmr.msrb.gmra.mxu1 %v1249_v37 }
  0x5e   :  { %578 = vmatpush.msra.mxu0 %v1000_v19  ;;  %623 = vmatpush.msra.mxu1 %v975_v5  ;;  %v457_v5 = vsub.f32 %v455_v3, %v456_v4 }
  0x5f   :  { %676 = vmatpush.msra.mxu2 %v1023_v27  ;;  %733 = vmatpush.msra.mxu3 %v977_v9 }
  0x60   :  { %581 = vmatpush.msra.mxu0 %v1003_v20  ;;  %625 = vmatpush.msra.mxu1 %v977_v9  ;;  %v458_v9 = vand.u32 4294901760, %v457_v5 }
  0x61   :  { %680 = vmatpush.msra.mxu2 %v1040_v33  ;;  %735 = vmatpush.msra.mxu3 %v979_v10 }
  0x62   :  { %584 = vmatpush.msra.mxu0 %v1026_v28  ;;  %627 = vmatpush.msra.mxu1 %v979_v10  ;;  %v1392_v10 = vld [vmem:[#allocation12_spill] sm:$0xff] }
  0x63   :  { %684 = vmatpush.msra.mxu2 %v1057_v41  ;;  %737 = vmatpush.msra.mxu3 %v981_v11 }
  0x64   :  { %587 = vmatpush.msra.mxu0 %v1051_v39  ;;  %629 = vmatpush.msra.mxu1 %v981_v11  ;;  %v1393_v11 = vld [vmem:[#allocation13_spill] sm:$0xff] }
  0x65   :  { %688 = vmatpush.msra.mxu2 %v1079_v50  ;;  %739 = vmatpush.msra.mxu3 %v994_v17 }
  0x66   :  { %590 = vmatpush.msra.mxu0 %v1064_v44  ;;  %631 = vmatpush.msra.mxu1 %v994_v17 }
  0x67   :  { %692 = vmatpush.msra.mxu2 %v1095_v56  ;;  %741 = vmatpush.msra.mxu3 %v1016_v25 }
  0x68   :  { %593 = vmatpush.msra.mxu0 %v1082_v51  ;;  %633 = vmatpush.msra.mxu1 %v1016_v25 }
  0x69   :  { %696 = vmatpush.msra.mxu2 %v1111_v62  ;;  %743 = vmatpush.msra.mxu3 %v1036_v32 }
  0x6a   :  { %596 = vmatpush.msra.mxu0 %v1098_v57  ;;  %635 = vmatpush.msra.mxu1 %v1036_v32 }
  0x6b   :  { %700 = vmatpush.msra.mxu2 %v1127_v7  ;;  %745 = vmatpush.msra.mxu3 %v1066_v45 }
  0x6c   :  { %599 = vmatpush.msra.mxu0 %v1392_v10  ;;  %637 = vmatpush.msra.mxu1 %v1066_v45 }
  0x6d   :  { %704 = vmatpush.msra.mxu2 %v1145_v30  ;;  %747 = vmatpush.msra.mxu3 %v1068_v46 }
  0x6e   :  { %459 = vmatmul.f32.vlgmr.msrb.gmra.mxu2 %v458_v9  ;;  %560 = vmatmul.f32.vlgmr.msrb.gmra.mxu3 %v1310_v14 }
  0x6f   :  { %602 = vmatpush.msra.mxu0 %v1393_v11  ;;  %639 = vmatpush.msra.mxu1 %v1068_v46 }
  0x70   :  { %708 = vmatpush.msra.mxu2 %v1159_v38  ;;  %749 = vmatpush.msra.mxu3 %v1084_v52 }
  0x71   :  { %605 = vmatpush.msra.mxu0 %v1148_v31  ;;  %641 = vmatpush.msra.mxu1 %v1084_v52  ;;  %v820_v31 = vld [vmem:[#allocation5] ss:$0 sm:$0xff] }
  0x72   :  { %712 = vmatpush.msra.mxu2 %v1173_v48  ;;  %751 = vmatpush.msra.mxu3 %v1100_v58 }
  0x73   :  { %608 = vmatpush.msra.mxu0 %v1162_v40  ;;  %643 = vmatpush.msra.mxu1 %v1100_v58  ;;  %v821_v40 = vld [vmem:[%s1385_s2] ss:$0 sm:$0xff] }
  0x74   :  { %716 = vmatpush.msra.mxu2 %v1187_v61  ;;  %753 = vmatpush.msra.mxu3 %v1116_v0 }
  0x75   :  { %611 = vmatpush.msra.mxu0 %v1176_v53  ;;  %645 = vmatpush.msra.mxu1 %v1116_v0 }
  0x76   :  { %720 = vmatpush.msra.mxu2 %v1198_v29  ;;  %755 = vmatpush.msra.mxu3 %v1132_v12 }
  0x77   :  { %614 = vmatmul.f32.vlgmr.msra.gmra.mxu0 %v455_v3  ;;  %722 = vmatmul.f32.vlgmr.msra.gmra.mxu2 %v1310_v14 }
  0x78   :  { %647 = vmatpush.msra.mxu1 %v1132_v12  ;;  %757 = vmatpush.msra.mxu3 %v1136_v13 }
  0x79   :  { %759 = vmatmul.f32.vlgmr.msra.gmra.mxu3 %v1310_v14 }
  0x7a   :  { %649 = vmatpush.msra.mxu1 %v1136_v13 }
  0x7b   :  { %653 = vmatmul.f32.vlgmr.msra.gmra.mxu1 %v456_v4 }
  0xce   :  { %v118_v15 = vpop.f32.mrf.mxu0 }
  0xd2   :  { %v219_v16 = vpop.f32.mrf.mxu1  ;;  %v273_v18 = vpop.f32.mrf.mxu2 }
  0xd3   :  { %v220_v17 = vadd.f32 %v219_v16, %v118_v15 }
  0xd4   :  { %v312_v20 = vpop.f32.mrf.mxu3 }
  0xd5   :  { %v274_v19 = vadd.f32 %v273_v18, %v220_v17 }
  0xd7   :  { %v313_v23 = vadd.f32 %v312_v20, %v274_v19 }
  0xd8   :  { %v381_v22 = vpop.f32.mrf.mxu0 }
  0xd9   :  { %v382_v25 = vadd.f32 %v381_v22, %v313_v23 }
  0xda   :  { %v418_v24 = vpop.f32.mrf.mxu1 }
  0xdb   :  { %v419_v33 = vadd.f32 %v418_v24, %v382_v25 }
  0xdd   :  { %v763_v44 = vmul.f32 0.03125, %v419_v33 }
  0xdf   :  { %v764_v52 = vmul.f32 %v763_v44, %v419_v33  ;;  %v780_v30 = vsub.f32 %v1240_v36, %v763_v44 }
  0xf1   :  { %v460_v26 = vpop.f32.mrf.mxu2  ;;  %v561_v27 = vpop.f32.mrf.mxu3 }
  0xf2   :  { %v562_v28 = vadd.f32 %v561_v27, %v460_v26 }
  0xf4   :  { %v615_v32 = vpop.f32.mrf.mxu0 }
  0xf5   :  { %v616_v39 = vadd.f32 %v615_v32, %v562_v28 }
  0xf8   :  { %v654_v41 = vpop.f32.mrf.mxu1 }
  0xf9   :  { %v655_v45 = vadd.f32 %v654_v41, %v616_v39 }
  0xfa   :  { %v723_v46 = vpop.f32.mrf.mxu2 }
  0xfb   :  { %v724_v50 = vadd.f32 %v723_v46, %v655_v45 }
  0xfc   :  { %v760_v51 = vpop.f32.mrf.mxu3 }
  0xfd   :  { %v761_v56 = vadd.f32 %v760_v51, %v724_v50 }
  0xff   :  { %v765_v57 = vsub.f32 %v761_v56, %v764_v52 }
 0x101   :  { %v766_v58 = vmul.f32 0.032258064, %v765_v57 }
 0x103   :  { %v767_v62 = vmax.f32 %v766_v58, 0.0 }
 0x105   :  { %v768_v0 = vadd.f32 1e-05, %v767_v62 }
 0x107   :  { %822 = vrsqrt.f32 %v768_v0  ;;  %vm775_vm1 = vweird.f32 %v768_v0 }
 0x10d   :  { %v823_v2 = vpop.eup %822 }
 0x10e   :  { %v770_v7 = vmul.f32 %v823_v2, %v768_v0  ;;  %vm776_vm0 = vweird.f32 %v823_v2 }
 0x10f   :  { %vm777_vm2 = vmor %vm775_vm1, %vm776_vm0 }
 0x110   :  { %v771_v8 = vmul.f32 %v823_v2, %v770_v7 }
 0x112   :  { %v772_v12 = vmul.f32 0.5, %v771_v8 }
 0x114   :  { %v773_v13 = vsub.f32 1.5, %v772_v12 }
 0x116   :  { %v774_v21 = vmul.f32 %v823_v2, %v773_v13 }
 0x118   :  { %v778_v34 = vsel %vm777_vm2, %v823_v2, %v774_v21 }
 0x119   :  { %v781_v38 = vmul.f32 %v780_v30, %v778_v34 }
 0x11b   :  { %v785_v42 = vmul.f32 %v820_v31, %v781_v38 }
 0x11d   :  { %v790_v48 = vadd.f32 %v821_v40, %v785_v42 }
 0x11f   :  { %791 = vst [vmem:[#allocation8] sm:$0xff] %v790_v48 }
 0x120   :  { %795 = vsyncadd [#allocation4], 64  ;;  %s798_s9 = sshll.u32 %s1387_s4, 4  ;;  %s933_s10 = smov [#allocation8]   ;;  %s799_s9 = int_to_ptr.hbm [resolvable:$true] %s798_s9 }
 0x121   :  { %s796_s11 = sshll.u32 %s933_s10, 4  ;;  %s797_s11 = int_to_ptr.vmem [resolvable:$true] %s796_s11 }
 0x122   :  { %804 = dma.vmem_to_hbm [thread:$0]  %s797_s11, 64, %s799_s9, [#allocation4], %s928_s25, %s928_s25, %s929_s26  }
 0x123   :  { %924 = dma.done.wait [#allocation4], 128  }
 0x124   :  { %925 = vsyncadd [#allocation4], 4294967168 }
 0x125   :  { %809 = vsyncpa [#allocation3], 1 }
 0x126   :  { %810 = vsyncpa [#allocation6], 1 }
 0x127   :  { %811 = vsyncpa [#allocation4], 1 }

</bundles_post_ra>
